<compile_context>
chip_gen: v6e
topology: v6e:2x2x1
jax: 0.10.0
libtpu: 0.0.40
codegen_flags: <defaults>
</compile_context>

<pallas_src>
import jax
import jax.numpy as jnp
from jax.experimental import pallas as pl
from jax.experimental.pallas import tpu as pltpu


# ----------------------------------------------------------------------------
# Kernels
# ----------------------------------------------------------------------------
def epoct_encoder_kernel(x_ref, s_ref, w1x_ref, w1s_ref, b1_ref,
                         w2_ref, b2_ref, out_ref):
    """Single step, one batch tile.  Everything is lane-dense (batch on lanes)."""
    s = s_ref[...]                                          # (S, TB)
    h = (w1x_ref[...] * x_ref[...]                          # (H,1)*(1,TB)->(H,TB)
         + jnp.dot(w1s_ref[...], s,                         # (H,S)@(S,TB)
                   preferred_element_type=jnp.float32)
         + b1_ref[...])                                     # (H,1) broadcast
    h = jnp.maximum(h, 0.0)                                 # ReLU
    out_ref[...] = (s
                    + jnp.dot(w2_ref[...], h,               # (S,H)@(H,TB)
                              preferred_element_type=jnp.float32)
                    + b2_ref[...]).astype(out_ref.dtype)


def epoct_encoder_scan_kernel(x_ref, s0_ref, w1x_ref, w1s_ref, b1_ref,
                              w2_ref, b2_ref, out_ref, s_vmem):
    """Recurrent scan over a time chunk.

    Grid: (batch_tiles [parallel], time_chunks [arbitrary]).
    x_ref is the whole (Tc, 1, TB) time chunk for this batch tile; the time
    loop is an in-kernel fori_loop with the state carried in vregs.  The state
    is persisted across time chunks in VMEM scratch and written to HBM once.
    """
    c = pl.program_id(1)
    nc = pl.num_programs(1)
    H, S = w1s_ref.shape
    tb = s0_ref.shape[-1]
    Tc = x_ref.shape[0]

    @pl.when(c == 0)
    def _():
        s_vmem[...] = s0_ref[...].astype(jnp.float32)

    # Hoist weight loads and lane-broadcasts above the time loop
    # (JAX does not CSE broadcast_in_dim; per-step re-broadcast wastes VPU/XLU).
    w1s = w1s_ref[...]                                      # (H, S)
    w2 = w2_ref[...]                                        # (S, H)
    w1x_b = jnp.broadcast_to(w1x_ref[...], (H, tb))         # (H, TB)
    b1_b = jnp.broadcast_to(b1_ref[...], (H, tb))           # (H, TB)
    b2_b = jnp.broadcast_to(b2_ref[...], (S, tb))           # (S, TB)

    def step(t, s):
        xt = x_ref[t]                                       # (1, TB) at time t
        h = jnp.maximum(
            w1x_b * xt
            + jnp.dot(w1s, s, preferred_element_type=jnp.float32)
            + b1_b, 0.0)
        return s + jnp.dot(w2, h, preferred_element_type=jnp.float32) + b2_b

    # Carry the state as the loop carry (≈ S*tb*4 bytes of vregs).  Unroll
    # short chunks so the LLO scheduler sees the whole chain.
    s_final = jax.lax.fori_loop(0, Tc, step, s_vmem[...], unroll=(Tc <= 16))
    s_vmem[...] = s_final                                   # persist across chunks

    @pl.when(c == nc - 1)
    def _():
        out_ref[...] = s_final.astype(out_ref.dtype)        # single HBM writeback


# ----------------------------------------------------------------------------
# Parameter / layout helpers (hoisted out of the hot path)
# ----------------------------------------------------------------------------
def prepare_params(w1, b1, w2, b2):
    """Call once per weight update.

    w1: (H, 1+S) (nn.Linear layout [out, in]); b1: (H,); w2: (S, H); b2: (S,)
    The lane-dense formulation needs no weight transposes at all.
    """
    H = w1.shape[0]
    S = w2.shape[0]
    return (w1[:, :1],            # (H, 1)  column of W1 multiplying x
            w1[:, 1:],            # (H, S)  columns of W1 multiplying state
            b1.reshape(H, 1),     # (H, 1)
            w2,                   # (S, H)
            b2.reshape(S, 1))     # (S, 1)


def _pad_lanes(a, target):
    pad = target - a.shape[-1]
    if pad == 0:
        return a
    cfg = [(0, 0)] * (a.ndim - 1) + [(0, pad)]
    return jnp.pad(a, cfg)


def _lane_tiling(B, tb):
    """Pick a lane tile (multiple of 128) and padded batch Bp with Bp % tb == 0.

    v7x note: choose tb so the batch grid has >= 2 (ideally an even number of)
    tiles — the "parallel" batch axis is what shards work across its 2 TCs.
    """
    tb = max(128, (tb // 128) * 128)
    Bp = pl.cdiv(B, 128) * 128
    tb = min(tb, Bp)
    Bp = pl.cdiv(Bp, tb) * tb
    return Bp, tb


def to_lane_dense(state, Bp):
    """(B, S) -> padded lane-dense (S, Bp).  Padded lanes are zero."""
    return _pad_lanes(state.T, Bp)


def x_to_lane_dense(x, Bp):
    """(B, 1) -> padded lane-dense (1, Bp)."""
    return _pad_lanes(x.T, Bp)


def xs_to_lane_dense(xs, Bp):
    """(T, B, 1) -> padded lane-dense (T, 1, Bp)."""
    return _pad_lanes(jnp.transpose(xs, (0, 2, 1)), Bp)


def from_lane_dense(state_t, B):
    """Padded lane-dense (S, Bp) -> (B, S)."""
    return state_t[:, :B].T


def _compiler_params(semantics, vmem_limit_bytes):
    kw = dict(dimension_semantics=semantics)
    if vmem_limit_bytes is not None:
        kw["vmem_limit_bytes"] = vmem_limit_bytes
    return pltpu.CompilerParams(**kw)


# ----------------------------------------------------------------------------
# Lane-dense (persistent-layout) entry points — no wrapper HBM round-trips.
# ----------------------------------------------------------------------------
def epoct_encoder_t(state_t, x_t, params, *, tb=512, vmem_limit_bytes=None):
    """Single step on lane-dense state.  state_t: (S, Bp), x_t: (1, Bp)."""
    w1x, w1s, b1c, w2, b2c = params
    S, Bp = state_t.shape
    H = w1s.shape[0]
    tb = min(tb, Bp)
    assert tb % 128 == 0 and Bp % tb == 0, "Bp must be a multiple of the lane tile"

    return pl.pallas_call(
        epoct_encoder_kernel,
        out_shape=jax.ShapeDtypeStruct((S, Bp), state_t.dtype),
        grid=(Bp // tb,),
        in_specs=[
            pl.BlockSpec((1, tb), lambda i: (0, i)),    # x^T tile
            pl.BlockSpec((S, tb), lambda i: (0, i)),    # state^T tile
            pl.BlockSpec((H, 1), lambda i: (0, 0)),     # W1 x-column (resident)
            pl.BlockSpec((H, S), lambda i: (0, 0)),     # W1 state-columns
            pl.BlockSpec((H, 1), lambda i: (0, 0)),     # b1
            pl.BlockSpec((S, H), lambda i: (0, 0)),     # W2
            pl.BlockSpec((S, 1), lambda i: (0, 0)),     # b2
        ],
        out_specs=pl.BlockSpec((S, tb), lambda i: (0, i)),
        compiler_params=_compiler_params(("parallel",), vmem_limit_bytes),
    )(x_t, state_t, w1x, w1s, b1c, w2, b2c)


def epoct_encoder_scan_t(state0_t, xs_t, params, *, tb=512, time_chunk=None,
                         vmem_limit_bytes=None):
    """Fused recurrence on lane-dense state: s[t] = forward(s[t-1], xs[t]).

    state0_t: (S, Bp), xs_t: (T, 1, Bp).  Returns final state (S, Bp).
    The time loop runs inside the kernel; state never leaves VMEM/vregs between
    steps and only the final state is written back to HBM.
    """
    w1x, w1s, b1c, w2, b2c = params
    S, Bp = state0_t.shape
    T = xs_t.shape[0]
    assert T >= 1, "epoct_encoder_scan requires at least one timestep"
    H = w1s.shape[0]
    tb = min(tb, Bp)
    assert tb % 128 == 0 and Bp % tb == 0, "Bp must be a multiple of the lane tile"

    Tc = T if time_chunk is None else min(time_chunk, T)
    assert T % Tc == 0, "T must be a multiple of time_chunk"
    nc = T // Tc

    return pl.pallas_call(
        epoct_encoder_scan_kernel,
        out_shape=jax.ShapeDtypeStruct((S, Bp), state0_t.dtype),
        grid=(Bp // tb, nc),                               # time axis last
        in_specs=[
            pl.BlockSpec((Tc, 1, tb), lambda b, c: (c, 0, b)),  # x chunk
            pl.BlockSpec((S, tb), lambda b, c: (0, b)),         # initial state
            pl.BlockSpec((H, 1), lambda b, c: (0, 0)),          # weights resident
            pl.BlockSpec((H, S), lambda b, c: (0, 0)),
            pl.BlockSpec((H, 1), lambda b, c: (0, 0)),
            pl.BlockSpec((S, H), lambda b, c: (0, 0)),
            pl.BlockSpec((S, 1), lambda b, c: (0, 0)),
        ],
        out_specs=pl.BlockSpec((S, tb), lambda b, c: (0, b)),
        scratch_shapes=[pltpu.VMEM((S, tb), jnp.float32)],      # state across chunks
        compiler_params=_compiler_params(("parallel", "arbitrary"),
                                         vmem_limit_bytes),
    )(xs_t, state0_t, w1x, w1s, b1c, w2, b2c)


# ----------------------------------------------------------------------------
# Plain-layout convenience wrappers (pay transpose/pad HBM traffic per call;
# prefer the *_t API when the state can stay lane-dense across calls).
# ----------------------------------------------------------------------------
def epoct_encoder(state, x, params, *, tb=512, vmem_limit_bytes=None):
    """state: (B, S), x: (B, 1) -> (B, S)."""
    B, _ = state.shape
    Bp, tb = _lane_tiling(B, tb)
    out_t = epoct_encoder_t(to_lane_dense(state, Bp), x_to_lane_dense(x, Bp),
                            params, tb=tb, vmem_limit_bytes=vmem_limit_bytes)
    return from_lane_dense(out_t, B)


def epoct_encoder_scan(state0, xs, params, *, tb=512, time_chunk=None,
                       vmem_limit_bytes=None):
    """state0: (B, S), xs: (T, B, 1) -> final state (B, S)."""
    B, _ = state0.shape
    Bp, tb = _lane_tiling(B, tb)
    out_t = epoct_encoder_scan_t(to_lane_dense(state0, Bp),
                                 xs_to_lane_dense(xs, Bp),
                                 params, tb=tb, time_chunk=time_chunk,
                                 vmem_limit_bytes=vmem_limit_bytes)
    return from_lane_dense(out_t, B)


# ----------------------------------------------------------------------------
# Pure-JAX reference
# ----------------------------------------------------------------------------
def epoct_encoder_ref(state, x, w1, b1, w2, b2):
    cat = jnp.concatenate([x, state], axis=-1)
    h = jnp.maximum(cat @ w1.T + b1, 0.0)
    return state + h @ w2.T + b2


if __name__ == "__main__":
    STATE_SIZE = 16
    HIDDEN = 32
    B = 200          # non-multiple of 128: exercises lane padding
    T = 8

    key = jax.random.PRNGKey(0)
    k_state, k_x, k_xs, k_w1, k_w2, k_b1, k_b2 = jax.random.split(key, 7)

    state = jax.random.normal(k_state, (B, STATE_SIZE), dtype=jnp.float32)
    x = jax.random.normal(k_x, (B, 1), dtype=jnp.float32)
    xs = jax.random.normal(k_xs, (T, B, 1), dtype=jnp.float32)

    # Deterministic small random init (nn.Linear shapes: [out, in]).  The
    # module's init_weights would zero fc2 and make the output == state, so we
    # use non-trivial weights to exercise the math path.
    w1 = 0.1 * jax.random.normal(k_w1, (HIDDEN, 1 + STATE_SIZE), dtype=jnp.float32)
    b1 = 0.1 * jax.random.normal(k_b1, (HIDDEN,), dtype=jnp.float32)
    w2 = 0.1 * jax.random.normal(k_w2, (STATE_SIZE, HIDDEN), dtype=jnp.float32)
    b2 = 0.1 * jax.random.normal(k_b2, (STATE_SIZE,), dtype=jnp.float32)

    params = prepare_params(w1, b1, w2, b2)   # hoisted, once per weight update

    # --- single forward step (module semantics), default large tile ---
    out = jax.block_until_ready(epoct_encoder(state, x, params))
    ref = epoct_encoder_ref(state, x, w1, b1, w2, b2)
    assert out.shape == (B, STATE_SIZE)
    assert jnp.allclose(out, ref, atol=1e-4, rtol=1e-4), "single-step mismatch"

    # --- single forward step with a 2-tile parallel grid (tb=128) ---
    out2 = jax.block_until_ready(epoct_encoder(state, x, params, tb=128))
    assert jnp.allclose(out2, ref, atol=1e-4, rtol=1e-4), "multi-tile mismatch"

    # --- persistent lane-dense state across calls (no per-call round-trips) ---
    Bp, tb = _lane_tiling(B, 512)
    s_t = to_lane_dense(state, Bp)
    ref_p = state
    for t in range(3):
        s_t = epoct_encoder_t(s_t, x_to_lane_dense(xs[t], Bp), params, tb=tb)
        ref_p = epoct_encoder_ref(ref_p, xs[t], w1, b1, w2, b2)
    out_p = from_lane_dense(jax.block_until_ready(s_t), B)
    assert jnp.allclose(out_p, ref_p, atol=1e-4, rtol=1e-4), "persistent mismatch"

    # --- fused recurrent scan (in-kernel fori_loop over all T) ---
    out_T = jax.block_until_ready(epoct_encoder_scan(state, xs, params))
    ref_T = state
    for t in range(T):
        ref_T = epoct_encoder_ref(ref_T, xs[t], w1, b1, w2, b2)
    assert out_T.shape == (B, STATE_SIZE)
    assert jnp.allclose(out_T, ref_T, atol=1e-4, rtol=1e-4), "scan mismatch"

    # --- chunked scan (2 time chunks x 4 steps, 2 batch tiles) ---
    out_Tc = jax.block_until_ready(
        epoct_encoder_scan(state, xs, params, tb=128, time_chunk=4))
    assert jnp.allclose(out_Tc, ref_T, atol=1e-4, rtol=1e-4), "chunked scan mismatch"

    print("KERNEL_OK")
</pallas_src>

<mosaic_0001>
module attributes {stable_mosaic.version = 11 : i64} {
  func.func @epoct_encoder_kernel(%arg0: i32, %arg1: memref<1x256xf32, #tpu.memory_space<vmem>>, %arg2: memref<16x256xf32, #tpu.memory_space<vmem>>, %arg3: memref<32x1xf32, #tpu.memory_space<vmem>>, %arg4: memref<32x16xf32, #tpu.memory_space<vmem>>, %arg5: memref<32x1xf32, #tpu.memory_space<vmem>>, %arg6: memref<16x32xf32, #tpu.memory_space<vmem>>, %arg7: memref<16x1xf32, #tpu.memory_space<vmem>>, %arg8: memref<16x256xf32, #tpu.memory_space<vmem>>) attributes {dimension_semantics = [#tpu.dimension_semantics<parallel>], iteration_bounds = array<i64: 1>, scalar_prefetch = 0 : i64, scratch_operands = 0 : i64, tpu.core_type = #tpu.core_type<tc>, window_params = [{transform_indices = @transform_0, window_bounds = array<i64: 1, 256>}, {transform_indices = @transform_1, window_bounds = array<i64: 16, 256>}, {pipeline_mode = #tpu.pipeline_mode<synchronous>, transform_indices = @transform_2, window_bounds = array<i64: 32, 1>}, {pipeline_mode = #tpu.pipeline_mode<synchronous>, transform_indices = @transform_3, window_bounds = array<i64: 32, 16>}, {pipeline_mode = #tpu.pipeline_mode<synchronous>, transform_indices = @transform_4, window_bounds = array<i64: 32, 1>}, {pipeline_mode = #tpu.pipeline_mode<synchronous>, transform_indices = @transform_5, window_bounds = array<i64: 16, 32>}, {pipeline_mode = #tpu.pipeline_mode<synchronous>, transform_indices = @transform_6, window_bounds = array<i64: 16, 1>}, {transform_indices = @transform_7, window_bounds = array<i64: 16, 256>}]} {
    %c0 = arith.constant 0 : index
    %c0_0 = arith.constant 0 : index
    %0 = vector.load %arg2[%c0, %c0_0] : memref<16x256xf32, #tpu.memory_space<vmem>>, vector<16x256xf32>
    %c0_1 = arith.constant 0 : index
    %c0_2 = arith.constant 0 : index
    %1 = vector.load %arg3[%c0_1, %c0_2] : memref<32x1xf32, #tpu.memory_space<vmem>>, vector<32x1xf32>
    %c0_3 = arith.constant 0 : index
    %c0_4 = arith.constant 0 : index
    %2 = vector.load %arg1[%c0_3, %c0_4] : memref<1x256xf32, #tpu.memory_space<vmem>>, vector<1x256xf32>
    %3 = vector.broadcast %1 : vector<32x1xf32> to vector<32x256xf32>
    %4 = vector.broadcast %2 : vector<1x256xf32> to vector<32x256xf32>
    %5 = arith.mulf %3, %4 : vector<32x256xf32>
    %c0_5 = arith.constant 0 : index
    %c0_6 = arith.constant 0 : index
    %6 = vector.load %arg4[%c0_5, %c0_6] : memref<32x16xf32, #tpu.memory_space<vmem>>, vector<32x16xf32>
    %cst = arith.constant dense<0.000000e+00> : vector<32x256xf32>
    %7 = tpu.matmul %6, %0, %cst {dimension_numbers = #tpu.dot_dimension_numbers<[1], [0], [0], [1], [0, 0, 1, 1], [], []>} : vector<32x16xf32>, vector<16x256xf32>, vector<32x256xf32> -> vector<32x256xf32>
    %8 = arith.addf %5, %7 : vector<32x256xf32>
    %c0_7 = arith.constant 0 : index
    %c0_8 = arith.constant 0 : index
    %9 = vector.load %arg5[%c0_7, %c0_8] : memref<32x1xf32, #tpu.memory_space<vmem>>, vector<32x1xf32>
    %10 = vector.broadcast %9 : vector<32x1xf32> to vector<32x256xf32>
    %11 = arith.addf %8, %10 : vector<32x256xf32>
    %cst_9 = arith.constant 0.000000e+00 : f32
    %12 = vector.broadcast %cst_9 : f32 to vector<32x256xf32>
    %13 = arith.maximumf %11, %12 : vector<32x256xf32>
    %c0_10 = arith.constant 0 : index
    %c0_11 = arith.constant 0 : index
    %14 = vector.load %arg6[%c0_10, %c0_11] : memref<16x32xf32, #tpu.memory_space<vmem>>, vector<16x32xf32>
    %cst_12 = arith.constant dense<0.000000e+00> : vector<16x256xf32>
    %15 = tpu.matmul %14, %13, %cst_12 {dimension_numbers = #tpu.dot_dimension_numbers<[1], [0], [0], [1], [0, 0, 1, 1], [], []>} : vector<16x32xf32>, vector<32x256xf32>, vector<16x256xf32> -> vector<16x256xf32>
    %16 = arith.addf %0, %15 : vector<16x256xf32>
    %c0_13 = arith.constant 0 : index
    %c0_14 = arith.constant 0 : index
    %17 = vector.load %arg7[%c0_13, %c0_14] : memref<16x1xf32, #tpu.memory_space<vmem>>, vector<16x1xf32>
    %18 = vector.broadcast %17 : vector<16x1xf32> to vector<16x256xf32>
    %19 = arith.addf %16, %18 : vector<16x256xf32>
    %c0_15 = arith.constant 0 : index
    %c0_16 = arith.constant 0 : index
    %20 = vector.load %arg8[%c0_15, %c0_16] : memref<16x256xf32, #tpu.memory_space<vmem>>, vector<16x256xf32>
    tpu.vector_store %arg8[%c0_15, %c0_16], %19 {strides = array<i32>} : memref<16x256xf32, #tpu.memory_space<vmem>>, vector<16x256xf32>,
    return
  }
  func.func @transform_0(%arg0: i32) -> (i32, i32) {
    %c0_i32 = arith.constant 0 : i32
    %c0_i32_0 = arith.constant 0 : i32
    return %c0_i32, %arg0 : i32, i32
  }
  func.func @transform_1(%arg0: i32) -> (i32, i32) {
    %c0_i32 = arith.constant 0 : i32
    %c0_i32_0 = arith.constant 0 : i32
    return %c0_i32, %arg0 : i32, i32
  }
  func.func @transform_2(%arg0: i32) -> (i32, i32) {
    %c0_i32 = arith.constant 0 : i32
    %c0_i32_0 = arith.constant 0 : i32
    %c0_i32_1 = arith.constant 0 : i32
    return %c0_i32, %c0_i32_0 : i32, i32
  }
  func.func @transform_3(%arg0: i32) -> (i32, i32) {
    %c0_i32 = arith.constant 0 : i32
    %c0_i32_0 = arith.constant 0 : i32
    %c0_i32_1 = arith.constant 0 : i32
    return %c0_i32, %c0_i32_0 : i32, i32
  }
  func.func @transform_4(%arg0: i32) -> (i32, i32) {
    %c0_i32 = arith.constant 0 : i32
    %c0_i32_0 = arith.constant 0 : i32
    %c0_i32_1 = arith.constant 0 : i32
    return %c0_i32, %c0_i32_0 : i32, i32
  }
  func.func @transform_5(%arg0: i32) -> (i32, i32) {
    %c0_i32 = arith.constant 0 : i32
    %c0_i32_0 = arith.constant 0 : i32
    %c0_i32_1 = arith.constant 0 : i32
    return %c0_i32, %c0_i32_0 : i32, i32
  }
  func.func @transform_6(%arg0: i32) -> (i32, i32) {
    %c0_i32 = arith.constant 0 : i32
    %c0_i32_0 = arith.constant 0 : i32
    %c0_i32_1 = arith.constant 0 : i32
    return %c0_i32, %c0_i32_0 : i32, i32
  }
  func.func @transform_7(%arg0: i32) -> (i32, i32) {
    %c0_i32 = arith.constant 0 : i32
    %c0_i32_0 = arith.constant 0 : i32
    return %c0_i32, %arg0 : i32, i32
  }
}

</mosaic_0001>

<bundles_post_ra>
// kernel: tpu_custom_call.1
= control target key start
LH: loop header
LB: loop body
LE: loop exit
PB: predicated region body
PF: predicated region fallthrough
CT: control target
= control target key end

     0   :  { %v390_v4 = vmov 0.0   ;;  %vm79_vm0 = vcmask 130048   ;;  %v391_v6 = vmov 0   ;;  %s527_s0 = inlined_call_operand.vmem [shape: f32[1,256], index: 0, kind: input, shape index: {}]   ;;  %s528_s1 = inlined_call_operand.vmem [shape: f32[16,256], index: 1, kind: input, shape index: {}]   ;;  %s529_s2 = inlined_call_operand.vmem [shape: f32[32,1], index: 2, kind: input, shape index: {}]   ;;  %s530_s3 = inlined_call_operand.vmem [shape: f32[32,16], index: 3, kind: input, shape index: {}]   ;;  %s531_s4 = inlined_call_operand.vmem [shape: f32[32,1], index: 4, kind: input, shape index: {}]   ;;  %s532_s5 = inlined_call_operand.vmem [shape: f32[16,32], index: 5, kind: input, shape index: {}]   ;;  %s533_s6 = inlined_call_operand.vmem [shape: f32[16,1], index: 6, kind: input, shape index: {}]   ;;  %s534_s7 = inlined_call_operand.hbm [shape: f32[16,256], index: 7, kind: output, shape index: {}]  }
   0x1   :  { %v438_v0 = vld [vmem:[%s528_s1 + $0x18] sm:$0xff]  ;;  %v443_v1 = vld [vmem:[%s528_s1 + $0x10] sm:$0xff]  ;;  %v448_v2 = vld [vmem:[%s528_s1 + $0x8] sm:$0xff]  ;;  %156 = vmatprep.mubr.f32.mxu0 %v390_v4  ;;  %367 = vset.pattern.permute.xlu1 %v391_v6 }
   0x2   :  { %120 = vmatprep.subr.mxu0 %v438_v0  ;;  %v454_v3 = vld [vmem:[%s528_s1] sm:$0xff]  ;;  %v34_v7 = vld [vmem:[%s529_s2 + $0x18] sm:$0xff]  ;;  %366 = vset.pattern.permute.xlu0 %v391_v6  ;;  %v32_v8 = vld [vmem:[%s529_s2 + $0x8] sm:$0xff] }
   0x3   :  { %121 = vmatpush1.msra.mxu0 %v443_v1  ;;  %v75_v5 = vld [vmem:[%s530_s3] sm:$0xff]  ;;  %53 = vperm.xlu0 %366, %v34_v7   ;;  %v33_v9 = vld [vmem:[%s529_s2 + $0x10] sm:$0xff]  ;;  %v76_v10 = vld [vmem:[%s530_s3 + $0x8] sm:$0xff] }
   0x4   :  { %122 = vmatprep.subr.mxu0 %v448_v2  ;;  %43 = vperm.xlu1 %367, %v32_v8   ;;  %v192_v11 = vld [vmem:[%s531_s4 + $0x18] sm:$0xff] }
   0x5   :  { %123 = vmatpush1.msra.mxu0 %v454_v3  ;;  %302 = vmatprep.mubr.f32.mxu1 %v390_v4 }
   0x6   :  { %355 = vmatmul.mubr.msk.f32.vlgmr.msra.gmra.mxu0 %vm79_vm0, %v75_v5 }
   0x7   :  { %162 = vmatprep.mubr.f32.mxu0 %v390_v4 }
   0x8   :  { %12 = vsyncpa [#allocation3], 0  ;;  %48 = vperm.xlu0 %366, %v33_v9   ;;  %210 = vperm.xlu1 %367, %v192_v11   ;;  %v31_v12 = vld [vmem:[%s529_s2] sm:$0xff]  ;;  %v77_v13 = vld [vmem:[%s530_s3 + $0x10] sm:$0xff]  ;;  %v57_v20 = vlaneseq  ;;  %vm231_vm1 = vcmask 261120   ;;  %s392_s13 = smov [#allocation2]  }
   0x9   :  { %v191_v14 = vld [vmem:[%s531_s4 + $0x10] sm:$0xff]  ;;  %v190_v15 = vld [vmem:[%s531_s4 + $0x8] sm:$0xff]  ;;  %v78_v16 = vld [vmem:[%s530_s3 + $0x18] sm:$0xff]  ;;  %s344_s14 = sshll.u32 %s392_s13, 4  ;;  %s345_s14 = int_to_ptr.vmem [resolvable:$true] %s344_s14 }
   0xa   :  { %356 = vmatmul.mubr.msk.f32.gmra.mxu0 %vm79_vm0, %v76_v10  ;;  %v189_v17 = vld [vmem:[%s531_s4] sm:$0xff]  ;;  %v320_v19 = vld [vmem:[%s533_s6 + $0x8] sm:$0xff]  ;;  %v58_v22 = vshrl.u32 %v57_v20, 7  ;;  %p373_p1 = scmp.lt.s32.totalorder %s345_s14, %s345_s14 }
   0xb   :  { %168 = vmatprep.mubr.f32.mxu0 %v390_v4  ;;  %v319_v18 = vld [vmem:[%s533_s6] sm:$0xff] }
   0xc   :  { %38 = vperm.xlu0 %366, %v31_v12   ;;  %205 = vperm.xlu1 %367, %v191_v14   ;;  %v63_v26 = vsub.s32 1, %v58_v22  ;;  %v59_v27 = vsub.s32 0, %v58_v22  ;;  %v35_v29 = vld [vmem:[%s527_s0] sm:$0x3] }
   0xe   :  { %357 = vmatmul.mubr.msk.f32.gmra.mxu0 %vm79_vm0, %v77_v13  ;;  %v64_v32 = vrot.slane %v35_v29, %v63_v26  ;;  %v60_v34 = vrot.slane %v35_v29, %v59_v27 }
   0xf   :  { %174 = vmatprep.mubr.f32.mxu0 %v390_v4 }
  0x10   :  { %200 = vperm.xlu0 %366, %v190_v15   ;;  %195 = vperm.xlu1 %367, %v189_v17   ;;  %v230_v17 = vld [vmem:[%s532_s5 + $0x8] sm:$0xff] }
  0x12   :  { %358 = vmatmul.mubr.msk.f32.gmra.mxu0 %vm79_vm0, %v78_v16  ;;  %v229_v16 = vld [vmem:[%s532_s5] sm:$0xff]  ;;  %s368_s5 = scalar_lea.vmem %s345_s14, 512 }
  0x13   :  { %p369_p0 = scmp.ne.s32.totalorder %s345_s14, %s368_s5  ;;  %p374_p2 = scmp.lt.s32.totalorder %s368_s5, %s368_s5 }
  0x14   :  { %323 = vperm.xlu0 %366, %v319_v18   ;;  %328 = vperm.xlu1 %367, %v320_v19  }
  0x15   :  { %p375_p3 = por %p374_p2, %p373_p1 }
  0x17   :  { %p376_p4 = pnand %p375_p3, %p369_p0 }
  0x7e   :  { %v54_v21 = vpop.permute.xlu0 %53 }
  0x7f   :  { %v44_v24 = vpop.permute.xlu1 %43  ;;  %v73_v39 = vmul.f32 %v60_v34, %v54_v21  ;;  %v74_v44 = vmul.f32 %v64_v32, %v54_v21 }
  0x80   :  { %v70_v40 = vmul.f32 %v64_v32, %v44_v24  ;;  %v69_v42 = vmul.f32 %v60_v34, %v44_v24 }
  0x83   :  { %v49_v30 = vpop.permute.xlu0 %48  ;;  %v211_v33 = vpop.permute.xlu1 %210 }
  0x84   :  { %v72_v36 = vmul.f32 %v64_v32, %v49_v30  ;;  %v71_v37 = vmul.f32 %v60_v34, %v49_v30 }
  0x87   :  { %v39_v41 = vpop.permute.xlu0 %38  ;;  %v206_v45 = vpop.permute.xlu1 %205 }
  0x88   :  { %v68_v46 = vmul.f32 %v64_v32, %v39_v41  ;;  %v67_v49 = vmul.f32 %v60_v34, %v39_v41 }
  0x8b   :  { %v201_v60 = vpop.permute.xlu0 %200  ;;  %v196_v62 = vpop.permute.xlu1 %195 }
  0x8f   :  { %v324_v20 = vpop.permute.xlu0 %323 }
  0xc6   :  { %v158_v23 = vpop.f32.mrf.mxu0 }
  0xc7   :  { %v181_v59 = vadd.f32 %v158_v23, %v67_v49 }
  0xc8   :  { %v160_v25 = vpop.f32.mrf.mxu0 }
  0xc9   :  { %v182_v56 = vadd.f32 %v160_v25, %v68_v46  ;;  %v213_v10 = vadd.f32 %v196_v62, %v181_v59 }
  0xca   :  { %v164_v28 = vpop.f32.mrf.mxu0 }
  0xcb   :  { %v183_v54 = vadd.f32 %v164_v28, %v69_v42  ;;  %v214_v8 = vadd.f32 %v196_v62, %v182_v56  ;;  %v221_v15 = vmax.f32 %v213_v10, 0.0 }
  0xcc   :  { %v166_v31 = vpop.f32.mrf.mxu0 }
  0xcd   :  { %v184_v52 = vadd.f32 %v166_v31, %v70_v40  ;;  %v215_v6 = vadd.f32 %v201_v60, %v183_v54  ;;  %v222_v14 = vmax.f32 %v214_v8, 0.0 }
  0xce   :  { %v170_v35 = vpop.f32.mrf.mxu0 }
  0xcf   :  { %v185_v50 = vadd.f32 %v170_v35, %v71_v37  ;;  %v216_v63 = vadd.f32 %v201_v60, %v184_v52  ;;  %v223_v13 = vmax.f32 %v215_v6, 0.0 }
  0xd0   :  { %v172_v38 = vpop.f32.mrf.mxu0 }
  0xd1   :  { %v186_v47 = vadd.f32 %v172_v38, %v72_v36  ;;  %v217_v61 = vadd.f32 %v206_v45, %v185_v50  ;;  %v224_v12 = vmax.f32 %v216_v63, 0.0 }
  0xd2   :  { %v176_v43 = vpop.f32.mrf.mxu0 }
  0xd3   :  { %v187_v48 = vadd.f32 %v176_v43, %v73_v39  ;;  %v218_v57 = vadd.f32 %v206_v45, %v186_v47  ;;  %v225_v11 = vmax.f32 %v217_v61, 0.0 }
  0xd4   :  { %v178_v51 = vpop.f32.mrf.mxu0 }
  0xd5   :  { %v188_v53 = vadd.f32 %v178_v51, %v74_v44  ;;  %v219_v55 = vadd.f32 %v211_v33, %v187_v48  ;;  %v226_v9 = vmax.f32 %v218_v57, 0.0 }
  0xd7   :  { %v220_v58 = vadd.f32 %v211_v33, %v188_v53  ;;  %v227_v7 = vmax.f32 %v219_v55, 0.0 }
  0xd9   :  { %v228_v5 = vmax.f32 %v220_v58, 0.0 }
  0xdb   :  { %262 = vmatprep.subr.mxu1 %v228_v5 }
  0xdc   :  { %263 = vmatpush1.msra.mxu1 %v227_v7 }
  0xdd   :  { %264 = vmatprep.subr.mxu1 %v226_v9 }
  0xde   :  { %265 = vmatpush1.msra.mxu1 %v225_v11 }
  0xdf   :  { %266 = vmatprep.subr.mxu1 %v224_v12 }
  0xe0   :  { %267 = vmatpush1.msra.mxu1 %v223_v13 }
  0xe1   :  { %268 = vmatprep.subr.mxu1 %v222_v14 }
  0xe2   :  { %269 = vmatpush1.msra.mxu1 %v221_v15 }
  0xe3   :  { %359 = vmatmul.mubr.msk.f32.vlgmr.msra.gmra.mxu1 %vm231_vm1, %v229_v16 }
  0xe4   :  { %308 = vmatprep.mubr.f32.mxu1 %v390_v4  ;;  %v329_v4 = vpop.permute.xlu1 %328 }
  0xe7   :  { %360 = vmatmul.mubr.msk.f32.gmra.mxu1 %vm231_vm1, %v230_v17 }
 0x1a3   :  { %v304_v18 = vpop.f32.mrf.mxu1 }
 0x1a4   :  { %v315_v19 = vadd.f32 %v304_v18, %v454_v3 }
 0x1a5   :  { %v306_v21 = vpop.f32.mrf.mxu1 }
 0x1a6   :  { %v331_v22 = vadd.f32 %v324_v20, %v315_v19  ;;  %v316_v23 = vadd.f32 %v306_v21, %v448_v2 }
 0x1a7   :  { %v310_v24 = vpop.f32.mrf.mxu1 }
 0x1a8   :  { %335 = vst [vmem:[#allocation2] sm:$0xff] %v331_v22  ;;  %v332_v25 = vadd.f32 %v324_v20, %v316_v23  ;;  %v317_v26 = vadd.f32 %v310_v24, %v443_v1 }
 0x1a9   :  { %v312_v27 = vpop.f32.mrf.mxu1 }
 0x1aa   :  { %336 = vst [vmem:[#allocation2 + $0x8] sm:$0xff] %v332_v25  ;;  %v333_v28 = vadd.f32 %v329_v4, %v317_v26  ;;  %v318_v29 = vadd.f32 %v312_v27, %v438_v0 }
 0x1ac   :  { %337 = vst [vmem:[#allocation2 + $0x10] sm:$0xff] %v333_v28  ;;  %v334_v3 = vadd.f32 %v329_v4, %v318_v29 }
 0x1ae   :  { %338 = vst [vmem:[#allocation2 + $0x18] sm:$0xff] %v334_v3 }
 0x1af   :  { %379 = shalt.err (!%p376_p4)
}
 0x1b0   :  { %s393_s15 = smov 256   ;;  %s394_s16 = smov 16  }
 0x1b1   :  { %350 = dma.vmem_to_hbm [thread:$0]  %s345_s14, 512, %s534_s7, [#allocation3], %s393_s15, %s393_s15, %s394_s16  }
 0x1b2   :  { %388 = dma.done.wait [#allocation3], 512  }
 0x1b3   :  { %389 = vsyncadd [#allocation3], 4294966784 }
 0x1b4   :  { %354 = vsyncpa [#allocation3], 1 }

</bundles_post_ra>
